<compile_context>
chip_gen: v7x
topology: tpu7x:2x2x1
jax: 0.10.0
libtpu: 0.0.40
codegen_flags: <defaults>
</compile_context>

<pallas_src>
import jax
import jax.numpy as jnp
from jax.experimental import pallas as pl
from jax.experimental.pallas import tpu as pltpu

INPUT_SIZE = 6


def logreg_kernel(x_ref, w_ref, b_ref, o_ref):
    # x_ref: (INPUT_SIZE, TB) f32 VMEM  (feature-major, lane-dense)
    # w_ref: (INPUT_SIZE, 1)  f32 VMEM  (resident across the grid)
    # b_ref: (1, 1)           f32 SMEM  (scalar bias)
    # o_ref: (1, TB)          f32 VMEM  (lane-dense output slab)
    x = x_ref[...]                                       # (K, TB)
    w = w_ref[...]                                       # (K, 1) -> lane broadcast
    # VPU broadcast-multiply + XLU cross-sublane reduce -> (1, TB) logits.
    logits = jnp.sum(x * w, axis=0, keepdims=True) + b_ref[0, 0]
    # Sigmoid: exp on the EUP, exact divide on the VPU.
    o_ref[...] = (1.0 / (1.0 + jnp.exp(-logits))).astype(o_ref.dtype)


def _round_up(n, m):
    return pl.cdiv(n, m) * m


def logistic_regression(x, w, b, *, block_rows=4096):
    """x: (B, 6) f32, w: (1, 6) f32 (PyTorch Linear layout), b: (1,) f32 -> (B, 1)."""
    B, K = x.shape
    assert K == INPUT_SIZE

    # Lane-dense batch tile: multiple of 128 lanes, clamped to the (padded) batch.
    tb = min(_round_up(block_rows, 128), _round_up(B, 128))
    b_pad = _round_up(B, tb)
    num_tiles = b_pad // tb

    # Layout plumbing in the wrapper (feature-major x, weight column, 2-D bias).
    xt = jnp.transpose(x)                                # (K, B)
    if b_pad != B:
        xt = jnp.pad(xt, ((0, 0), (0, b_pad - B)))       # zero-pad the tail tile
    wt = jnp.reshape(w, (K, 1)).astype(jnp.float32)
    b2d = jnp.reshape(b, (1, 1)).astype(jnp.float32)

    out = pl.pallas_call(
        logreg_kernel,
        out_shape=jax.ShapeDtypeStruct((1, b_pad), x.dtype),
        grid_spec=pltpu.PrefetchScalarGridSpec(
            num_scalar_prefetch=0,
            grid=(num_tiles,),
            in_specs=[
                pl.BlockSpec((K, tb), lambda i: (0, i)),            # x^T tile, pipelined
                pl.BlockSpec((K, 1), lambda i: (0, 0)),             # weight column, resident
                pl.BlockSpec(memory_space=pltpu.MemorySpace.SMEM),  # scalar bias
            ],
            out_specs=pl.BlockSpec((1, tb), lambda i: (0, i)),      # lane-dense output
        ),
        compiler_params=pltpu.CompilerParams(
            dimension_semantics=("parallel",),
        ),
    )(xt, wt, b2d)

    return out[0, :B].reshape(B, 1)


if __name__ == "__main__":
    key = jax.random.PRNGKey(0)
    kx, kw, kb = jax.random.split(key, 3)

    # Deterministic synthetic parameters (mimic nn.Linear(6, 1) shapes).
    bound = 1.0 / (INPUT_SIZE ** 0.5)
    w = jax.random.uniform(kw, (1, INPUT_SIZE), jnp.float32, -bound, bound)
    b = jax.random.uniform(kb, (1,), jnp.float32, -bound, bound)

    # Small batch (single tile) and a non-multiple-of-tile batch (padded tail tile).
    for batch, block_rows in ((8, 4096), (300, 128)):
        x = jax.random.normal(kx, (batch, INPUT_SIZE), jnp.float32)
        out = logistic_regression(x, w, b, block_rows=block_rows)
        jax.block_until_ready(out)

        ref = jax.nn.sigmoid(x @ w.T + b)
        assert out.shape == (batch, 1), (out.shape, batch)
        assert jnp.allclose(out, ref, atol=1e-5, rtol=1e-5), (batch, block_rows)

    print("KERNEL_OK")
</pallas_src>

<mosaic_0001>
module attributes {stable_mosaic.version = 11 : i64} {
  func.func @logreg_kernel(%arg0: i32, %arg1: memref<6x128xf32, #tpu.memory_space<vmem>>, %arg2: memref<6x1xf32, #tpu.memory_space<vmem>>, %arg3: memref<1x1xf32, #tpu.memory_space<smem>>, %arg4: memref<1x128xf32, #tpu.memory_space<vmem>>) attributes {dimension_semantics = [#tpu.dimension_semantics<parallel>], iteration_bounds = array<i64: 1>, scalar_prefetch = 0 : i64, scratch_operands = 0 : i64, tpu.core_type = #tpu.core_type<tc>, window_params = [{transform_indices = @transform_0, window_bounds = array<i64: 6, 128>}, {pipeline_mode = #tpu.pipeline_mode<synchronous>, transform_indices = @transform_1, window_bounds = array<i64: 6, 1>}, {transform_indices = @transform_2, window_bounds = array<i64: 1, 1>}, {transform_indices = @transform_3, window_bounds = array<i64: 1, 128>}]} {
    %c0 = arith.constant 0 : index
    %c0_0 = arith.constant 0 : index
    %0 = vector.load %arg1[%c0, %c0_0] : memref<6x128xf32, #tpu.memory_space<vmem>>, vector<6x128xf32>
    %c0_1 = arith.constant 0 : index
    %c0_2 = arith.constant 0 : index
    %1 = vector.load %arg2[%c0_1, %c0_2] : memref<6x1xf32, #tpu.memory_space<vmem>>, vector<6x1xf32>
    %2 = vector.broadcast %1 : vector<6x1xf32> to vector<6x128xf32>
    %3 = arith.mulf %0, %2 : vector<6x128xf32>
    %cst = arith.constant dense<0.000000e+00> : vector<128xf32>
    %4 = vector.multi_reduction <add>, %3, %cst [0] : vector<6x128xf32> to vector<128xf32>
    %5 = vector.shape_cast %4 : vector<128xf32> to vector<1x128xf32>
    %c0_3 = arith.constant 0 : index
    %c0_4 = arith.constant 0 : index
    %6 = memref.load %arg3[%c0_3, %c0_4] : memref<1x1xf32, #tpu.memory_space<smem>>
    %7 = vector.broadcast %6 : f32 to vector<1x128xf32>
    %8 = arith.addf %5, %7 : vector<1x128xf32>
    %cst_5 = arith.constant 0.000000e+00 : f32
    %9 = vector.broadcast %cst_5 : f32 to vector<1x128xf32>
    %10 = arith.subf %9, %8 : vector<1x128xf32>
    %11 = math.exp %10 : vector<1x128xf32>
    %cst_6 = arith.constant 1.000000e+00 : f32
    %12 = vector.broadcast %cst_6 : f32 to vector<1x128xf32>
    %13 = arith.addf %12, %11 : vector<1x128xf32>
    %cst_7 = arith.constant 1.000000e+00 : f32
    %14 = vector.broadcast %cst_7 : f32 to vector<1x128xf32>
    %15 = arith.divf %14, %13 : vector<1x128xf32>
    %c0_8 = arith.constant 0 : index
    %c0_9 = arith.constant 0 : index
    %16 = vector.load %arg4[%c0_8, %c0_9] : memref<1x128xf32, #tpu.memory_space<vmem>>, vector<1x128xf32>
    tpu.vector_store %arg4[%c0_8, %c0_9], %15 {strides = array<i32>} : memref<1x128xf32, #tpu.memory_space<vmem>>, vector<1x128xf32>,
    return
  }
  func.func @transform_0(%arg0: i32) -> (i32, i32) {
    %c0_i32 = arith.constant 0 : i32
    %c0_i32_0 = arith.constant 0 : i32
    return %c0_i32, %arg0 : i32, i32
  }
  func.func @transform_1(%arg0: i32) -> (i32, i32) {
    %c0_i32 = arith.constant 0 : i32
    %c0_i32_0 = arith.constant 0 : i32
    %c0_i32_1 = arith.constant 0 : i32
    return %c0_i32, %c0_i32_0 : i32, i32
  }
  func.func @transform_2(%arg0: i32) -> (i32, i32) {
    %c0_i32 = arith.constant 0 : i32
    %c0_i32_0 = arith.constant 0 : i32
    %c0_i32_1 = arith.constant 0 : i32
    return %c0_i32, %c0_i32_0 : i32, i32
  }
  func.func @transform_3(%arg0: i32) -> (i32, i32) {
    %c0_i32 = arith.constant 0 : i32
    %c0_i32_0 = arith.constant 0 : i32
    return %c0_i32, %arg0 : i32, i32
  }
}

</mosaic_0001>

<bundles_post_ra>
// kernel: tpu_custom_call.1
= control target key start
LH: loop header
LB: loop body
LE: loop exit
PB: predicated region body
PF: predicated region fallthrough
CT: control target
= control target key end

     0   :  { %s130_s0 = inlined_call_operand.vmem [shape: f32[6,128], index: 0, kind: input, shape index: {}]   ;;  %s131_s1 = inlined_call_operand.vmem [shape: f32[6,1], index: 1, kind: input, shape index: {}]   ;;  %s132_s2 = inlined_call_operand.<no memory space> [shape: f32[1,1], index: 2, kind: input, shape index: {}]   ;;  %s133_s3 = inlined_call_operand.hbm [shape: f32[1,128], index: 3, kind: output, shape index: {}]  }
   0x1   :  { %v17_v0 = vld [vmem:[%s131_s1] sm:$0x3f] }
   0x2   :  { %9 = vsyncpa [#allocation4], 0  ;;  %v87_v1 = vmov 0   ;;  %v16_v2 = vld [vmem:[%s130_s0] sm:$0x3f]  ;;  %vm24_vm0 = vcmask 1045504   ;;  %v33_v11 = vstv %s132_s2 }
   0x3   :  { %58 = vset.pattern.permute.xlu0 %v87_v1  ;;  %s88_s0 = smov [#allocation3]  }
   0x4   :  { %20 = vperm.xlu0 %58, %v17_v0   ;;  %s48_s1 = sshll.u32 %s88_s0, 4  ;;  %s49_s1 = int_to_ptr.vmem [resolvable:$true] %s48_s1 }
   0x5   :  { %s63_s18 = scalar_lea.vmem %s49_s1, 16  ;;  %s67_s19 = scalar_lea.vmem %s49_s1, 32 }
   0x6   :  { %p64_p0 = scmp.ne.s32.totalorder %s49_s1, %s63_s18  ;;  %p68_p1 = scmp.lt.s32.totalorder %s49_s1, %s49_s1 }
   0x7   :  { %p69_p2 = scmp.lt.s32.totalorder %s67_s19, %s63_s18 }
   0x9   :  { %p70_p3 = por %p69_p2, %p68_p1 }
   0xb   :  { %p71_p4 = pnand %p70_p3, %p64_p0 }
  0x83   :  { %v21_v3 = vpop.permute.xlu0 %20 }
  0x84   :  { %v23_v4 = vmul.f32 %v21_v3, %v16_v2 }
  0x86   :  { %v25_v5 = vsel %vm24_vm0, %v23_v4, 0.0 }
  0x87   :  { %v26_v6 = vrot.slane %v25_v5, 4 }
  0x89   :  { %v27_v7 = vadd.f32 %v26_v6, %v25_v5 }
  0x8b   :  { %v28_v8 = vrot.slane %v27_v7, 2 }
  0x8d   :  { %v29_v9 = vadd.f32 %v28_v8, %v27_v7 }
  0x8f   :  { %v30_v10 = vrot.slane %v29_v9, 1 }
  0x91   :  { %v31_v12 = vadd.f32 %v30_v10, %v29_v9 }
  0x93   :  { %v34_v13 = vadd.f32 %v33_v11, %v31_v12 }
  0x95   :  { %v35_v14 = vsub.f32 0.0, %v34_v13 }
  0x97   :  { %v36_v15 = vmul.f32 1.442695, %v35_v14 }
  0x99   :  { %59 = vpow2.f32 %v36_v15 }
  0xa3   :  { %v60_v16 = vpop.eup %59 }
  0xa4   :  { %v38_v17 = vadd.f32 1.0, %v60_v16 }
  0xa6   :  { %61 = vrcp.f32 %v38_v17 }
  0xb0   :  { %v62_v18 = vpop.eup %61 }
  0xb1   :  { %41 = vst [vmem:[#allocation3] sm:$0x1] %v62_v18 }
  0xb2   :  { %74 = shalt.err (!%p71_p4)
}
  0xb3   :  { %s75_s21 = scalar_lea.hbm %s133_s3, 16 }
  0xb4   :  { %p76_p5 = scmp.ne.s32.totalorder %s133_s3, %s75_s21  ;;  %p79_p6 = scmp.lt.u32.totalorder %s75_s21, %s133_s3 }
  0xb6   :  { %p81_p7 = pnand %p79_p6, %p76_p5 }
  0xb8   :  { %84 = shalt.err (!%p81_p7)
}
  0xb9   :  { %51 = dma.vmem_to_hbm [thread:$0]  %s49_s1, 16, %s133_s3, [#allocation4]  }
  0xba   :  { %85 = dma.done.wait [#allocation4], 16  }
  0xbb   :  { %86 = vsyncadd [#allocation4], 4294967280 }
  0xbc   :  { %55 = vsyncpa [#allocation4], 1 }

</bundles_post_ra>
